<compile_context>
chip_gen: v5e
topology: v5e:2x2
jax: 0.10.0
libtpu: 0.0.40
codegen_flags: <defaults>
</compile_context>

<pallas_src>
import math
import functools

import jax
import jax.numpy as jnp
from jax import lax
from jax.experimental import pallas as pl
from jax.experimental.pallas import tpu as pltpu


LANE = 128  # TPU lane width; both outputs are lane-aligned (B, Sq, 128) stores.


# ----------------------------- in-kernel helpers -----------------------------

def _layernorm(x, gamma, beta, eps=1e-5):
    mu = jnp.mean(x, axis=-1, keepdims=True)
    var = jnp.mean((x - mu) ** 2, axis=-1, keepdims=True)
    return (x - mu) * lax.rsqrt(var + eps) * gamma + beta


# --------------------------------- kernel ------------------------------------

def _generator_kernel(emb_ref, pe_ref, noise_ref, maskb_ref,
                      wqs_ref, wks_ref, wvs_ref, wos_ref,
                      wqc_ref, wkc_ref, wvc_ref, woc_ref,
                      w1_ref, w2_ref, wfc_ref, vec_ref,
                      out_ref, attn_ref):
    B, Sq, D = noise_ref.shape
    Sk = emb_ref.shape[1]
    Skp = attn_ref.shape[2]                                # lane-padded attn width (128)
    DFF = w1_ref.shape[1]
    scale = 1.0 / math.sqrt(D)
    dot = functools.partial(jnp.dot, preferred_element_type=jnp.float32)

    # Packed parameter-vector slab (static slices: zero runtime cost).
    g1, be1 = vec_ref[0:1, :D], vec_ref[1:2, :D]
    g2, be2 = vec_ref[2:3, :D], vec_ref[3:4, :D]
    g3, be3 = vec_ref[4:5, :D], vec_ref[5:6, :D]
    b1 = vec_ref[6:7, :DFF]
    b2 = vec_ref[7:8, :D]
    bfc = vec_ref[8:9, :]                                  # (1, LANE), cols >= 3 are zero

    # PositionalEncoder: x * sqrt(d_vec) + pe   (dropout = identity in eval)
    enc = (emb_ref[...] * math.sqrt(D) + pe_ref[...]).reshape(B * Sk, D)   # (B*Sk, D)
    x = noise_ref[...].reshape(B * Sq, D)                                  # (B*Sq, D)

    # --- decoder self-attention (single head) ---
    q = dot(x, wqs_ref[...]).reshape(B, Sq, D)
    k = dot(x, wks_ref[...]).reshape(B, Sq, D)
    v = dot(x, wvs_ref[...]).reshape(B, Sq, D)
    s = jnp.einsum('bqd,bkd->bqk', q, k,
                   preferred_element_type=jnp.float32) * scale
    m = jnp.max(s, axis=-1, keepdims=True)
    e = jnp.exp(s - m)
    p = e * pl.reciprocal(jnp.sum(e, axis=-1, keepdims=True), approx=True)
    sa = jnp.einsum('bqk,bkd->bqd', p, v, preferred_element_type=jnp.float32)
    sa = dot(sa.reshape(B * Sq, D), wos_ref[...])
    x = _layernorm(x + sa, g1, be1)

    # --- decoder cross-attention over encoder output (K = Sk, no lane padding) ---
    qc = dot(x, wqc_ref[...]).reshape(B, Sq, D)
    kc = dot(enc, wkc_ref[...]).reshape(B, Sk, D)
    vc = dot(enc, wvc_ref[...]).reshape(B, Sk, D)
    logits = jnp.einsum('bqd,bkd->bqk', qc, kc,
                        preferred_element_type=jnp.float32) * scale + maskb_ref[...]
    mc = jnp.max(logits, axis=-1, keepdims=True)
    ec = jnp.exp(logits - mc)
    attn = ec / jnp.sum(ec, axis=-1, keepdims=True)        # exact: returned to caller
    ca = jnp.einsum('bqk,bkd->bqd', attn, vc, preferred_element_type=jnp.float32)
    ca = dot(ca.reshape(B * Sq, D), woc_ref[...])
    x = _layernorm(x + ca, g2, be2)

    # --- position-wise feed-forward ---
    h = jnp.maximum(dot(x, w1_ref[...]) + b1, 0.0)
    f = dot(h, w2_ref[...]) + b2
    x = _layernorm(x + f, g3, be3)

    # --- fc(d_vec -> 3) padded to LANE columns + hardtanh(-pi, pi) ---
    o = dot(x, wfc_ref[...]) + bfc                         # (B*Sq, LANE)
    out_ref[...] = jnp.clip(o, -math.pi, math.pi).reshape(B, Sq, LANE)

    # Lane-dense attention store: one full-width unmasked store of zeros, then a
    # tiny Sk-lane overwrite with the real probabilities (padding columns stay 0).
    attn_ref[...] = jnp.zeros((B, Sq, Skp), jnp.float32)
    attn_ref[:, :, 0:Sk] = attn


# ------------------------- one-time parameter packing --------------------------

def prepare_params(params):
    """Hoisted out of the forward: pack kernel-ready parameters exactly once."""
    D = params["wqs"].shape[0]
    DFF = params["w1"].shape[1]
    wfc_pad = jnp.zeros((D, LANE), jnp.float32).at[:, :3].set(params["wfc"])
    vec = jnp.zeros((16, LANE), jnp.float32)
    for i, (name, w) in enumerate([("g1", D), ("be1", D), ("g2", D), ("be2", D),
                                   ("g3", D), ("be3", D), ("b1", DFF), ("b2", D)]):
        vec = vec.at[i, :w].set(params[name].reshape(-1))
    vec = vec.at[8, :3].set(params["bfc"].reshape(-1))
    prepared = dict(params)
    prepared["wfc_pad"] = wfc_pad
    prepared["vec"] = vec
    return prepared


# --------------------------------- wrapper ------------------------------------

@jax.jit
def generator_forward(prepared, captions_index, input_mask, noise):
    B, Sk = captions_index.shape
    Sq = noise.shape[1]
    Skp = max(LANE, ((Sk + LANE - 1) // LANE) * LANE)      # lane-padded attn width

    # JAX glue: data-dependent embedding gather (stays outside the kernel).
    emb = prepared["emb"][captions_index].astype(jnp.float32)              # (B, Sk, D)
    # Additive mask bias over real keys only: valid -> 0, masked -> -1e9.
    maskb = ((1.0 - input_mask.astype(jnp.float32)) * (-1e9))[:, None, :]  # (B, 1, Sk)

    args = [emb, prepared["pe"][:Sk].astype(jnp.float32),
            noise.astype(jnp.float32), maskb,
            prepared["wqs"], prepared["wks"], prepared["wvs"], prepared["wos"],
            prepared["wqc"], prepared["wkc"], prepared["wvc"], prepared["woc"],
            prepared["w1"], prepared["w2"], prepared["wfc_pad"], prepared["vec"]]

    vmem = pl.BlockSpec(memory_space=pltpu.MemorySpace.VMEM)
    out_pad, attn_pad = pl.pallas_call(
        _generator_kernel,
        out_shape=[jax.ShapeDtypeStruct((B, Sq, LANE), jnp.float32),
                   jax.ShapeDtypeStruct((B, Sq, Skp), jnp.float32)],
        in_specs=[vmem] * len(args),
        out_specs=[vmem, vmem],
    )(*args)

    return out_pad[..., :3], attn_pad[..., :Sk]


# ----------------------------- parameter setup --------------------------------

def _sinusoidal_pe(seq_len, d_vec):
    pos = jnp.arange(seq_len, dtype=jnp.float32)[:, None]
    i = jnp.arange(0, d_vec, 2, dtype=jnp.float32)
    div = jnp.exp(-(math.log(10000.0)) * i / d_vec)
    pe = jnp.zeros((seq_len, d_vec), jnp.float32)
    pe = pe.at[:, 0::2].set(jnp.sin(pos * div))
    pe = pe.at[:, 1::2].set(jnp.cos(pos * div))
    return pe


def make_params(key, vocab, d_vec, d_ff, seq_k):
    keys = jax.random.split(key, 16)
    n = lambda k, shape, s=0.02: s * jax.random.normal(k, shape, jnp.float32)
    return {
        "emb": n(keys[0], (vocab, d_vec), 1.0 / math.sqrt(d_vec)),
        "pe": _sinusoidal_pe(seq_k, d_vec),
        # self-attention
        "wqs": n(keys[1], (d_vec, d_vec)), "wks": n(keys[2], (d_vec, d_vec)),
        "wvs": n(keys[3], (d_vec, d_vec)), "wos": n(keys[4], (d_vec, d_vec)),
        "g1": jnp.ones((1, d_vec), jnp.float32), "be1": jnp.zeros((1, d_vec), jnp.float32),
        # cross-attention
        "wqc": n(keys[5], (d_vec, d_vec)), "wkc": n(keys[6], (d_vec, d_vec)),
        "wvc": n(keys[7], (d_vec, d_vec)), "woc": n(keys[8], (d_vec, d_vec)),
        "g2": jnp.ones((1, d_vec), jnp.float32), "be2": jnp.zeros((1, d_vec), jnp.float32),
        # feed-forward
        "w1": n(keys[9], (d_vec, d_ff)), "b1": jnp.zeros((1, d_ff), jnp.float32),
        "w2": n(keys[10], (d_ff, d_vec)), "b2": jnp.zeros((1, d_vec), jnp.float32),
        "g3": jnp.ones((1, d_vec), jnp.float32), "be3": jnp.zeros((1, d_vec), jnp.float32),
        # final fc: Linear(d_vec, 3)
        "wfc": n(keys[11], (d_vec, 3)), "bfc": jnp.zeros((1, 3), jnp.float32),
    }


# ----------------------------------- main -------------------------------------

if __name__ == "__main__":
    B, Sq, Sk, D, DFF = 2, 8, 8, 32, 64
    VOCAB = 27297

    key = jax.random.PRNGKey(0)
    kp, kc, kn = jax.random.split(key, 3)

    params = make_params(kp, VOCAB, D, DFF, Sk)
    prepared = prepare_params(params)          # one-time packing (hoisted per review)

    captions_index = jax.random.randint(kc, (B, Sk), 0, VOCAB, dtype=jnp.int32)
    # last two caption positions are padding
    input_mask = jnp.ones((B, Sk), jnp.float32).at[:, 6:].set(0.0)
    noise = jax.random.normal(kn, (B, Sq, D), jnp.float32)

    out, attn = generator_forward(prepared, captions_index, input_mask, noise)
    jax.block_until_ready((out, attn))

    assert out.shape == (B, Sq, 3) and attn.shape == (B, Sq, Sk)
    assert bool(jnp.all(jnp.abs(out) <= math.pi + 1e-6))
    # returned attention is an exact softmax: rows sum to 1 and masked keys get ~0
    assert bool(jnp.all(jnp.abs(jnp.sum(attn, axis=-1) - 1.0) < 1e-4))
    assert bool(jnp.all(attn[:, :, 6:] < 1e-6))
    # TODO(synk): dropout(p=0.1) from the PyTorch module is omitted (eval-mode identity).
    print("KERNEL_OK")
</pallas_src>

<mosaic_0001>
module attributes {stable_mosaic.version = 11 : i64} {
  func.func @_generator_kernel(%arg0: memref<2x8x32xf32, #tpu.memory_space<vmem>>, %arg1: memref<8x32xf32, #tpu.memory_space<vmem>>, %arg2: memref<2x8x32xf32, #tpu.memory_space<vmem>>, %arg3: memref<2x1x8xf32, #tpu.memory_space<vmem>>, %arg4: memref<32x32xf32, #tpu.memory_space<vmem>>, %arg5: memref<32x32xf32, #tpu.memory_space<vmem>>, %arg6: memref<32x32xf32, #tpu.memory_space<vmem>>, %arg7: memref<32x32xf32, #tpu.memory_space<vmem>>, %arg8: memref<32x32xf32, #tpu.memory_space<vmem>>, %arg9: memref<32x32xf32, #tpu.memory_space<vmem>>, %arg10: memref<32x32xf32, #tpu.memory_space<vmem>>, %arg11: memref<32x32xf32, #tpu.memory_space<vmem>>, %arg12: memref<32x64xf32, #tpu.memory_space<vmem>>, %arg13: memref<64x32xf32, #tpu.memory_space<vmem>>, %arg14: memref<32x128xf32, #tpu.memory_space<vmem>>, %arg15: memref<16x128xf32, #tpu.memory_space<vmem>>, %arg16: memref<2x8x128xf32, #tpu.memory_space<vmem>>, %arg17: memref<2x8x128xf32, #tpu.memory_space<vmem>>) attributes {dimension_semantics = [], scalar_prefetch = 0 : i64, scratch_operands = 0 : i64, tpu.core_type = #tpu.core_type<tc>} {
    %c0 = arith.constant 0 : index
    %c0_0 = arith.constant 0 : index
    %0 = vector.load %arg15[%c0, %c0_0] : memref<16x128xf32, #tpu.memory_space<vmem>>, vector<1x32xf32>
    %c1 = arith.constant 1 : index
    %c0_1 = arith.constant 0 : index
    %1 = vector.load %arg15[%c1, %c0_1] : memref<16x128xf32, #tpu.memory_space<vmem>>, vector<1x32xf32>
    %c2 = arith.constant 2 : index
    %c0_2 = arith.constant 0 : index
    %2 = vector.load %arg15[%c2, %c0_2] : memref<16x128xf32, #tpu.memory_space<vmem>>, vector<1x32xf32>
    %c3 = arith.constant 3 : index
    %c0_3 = arith.constant 0 : index
    %3 = vector.load %arg15[%c3, %c0_3] : memref<16x128xf32, #tpu.memory_space<vmem>>, vector<1x32xf32>
    %c4 = arith.constant 4 : index
    %c0_4 = arith.constant 0 : index
    %4 = vector.load %arg15[%c4, %c0_4] : memref<16x128xf32, #tpu.memory_space<vmem>>, vector<1x32xf32>
    %c5 = arith.constant 5 : index
    %c0_5 = arith.constant 0 : index
    %5 = vector.load %arg15[%c5, %c0_5] : memref<16x128xf32, #tpu.memory_space<vmem>>, vector<1x32xf32>
    %c6 = arith.constant 6 : index
    %c0_6 = arith.constant 0 : index
    %6 = vector.load %arg15[%c6, %c0_6] : memref<16x128xf32, #tpu.memory_space<vmem>>, vector<1x64xf32>
    %c7 = arith.constant 7 : index
    %c0_7 = arith.constant 0 : index
    %7 = vector.load %arg15[%c7, %c0_7] : memref<16x128xf32, #tpu.memory_space<vmem>>, vector<1x32xf32>
    %c8 = arith.constant 8 : index
    %c0_8 = arith.constant 0 : index
    %8 = vector.load %arg15[%c8, %c0_8] : memref<16x128xf32, #tpu.memory_space<vmem>>, vector<1x128xf32>
    %c0_9 = arith.constant 0 : index
    %c0_10 = arith.constant 0 : index
    %c0_11 = arith.constant 0 : index
    %9 = vector.load %arg0[%c0_9, %c0_10, %c0_11] : memref<2x8x32xf32, #tpu.memory_space<vmem>>, vector<2x8x32xf32>
    %cst = arith.constant 5.65685415 : f32
    %10 = vector.broadcast %cst : f32 to vector<2x8x32xf32>
    %11 = arith.mulf %9, %10 : vector<2x8x32xf32>
    %c0_12 = arith.constant 0 : index
    %c0_13 = arith.constant 0 : index
    %12 = vector.load %arg1[%c0_12, %c0_13] : memref<8x32xf32, #tpu.memory_space<vmem>>, vector<8x32xf32>
    %13 = vector.shape_cast %12 : vector<8x32xf32> to vector<1x8x32xf32>
    %14 = vector.broadcast %13 : vector<1x8x32xf32> to vector<2x8x32xf32>
    %15 = arith.addf %11, %14 : vector<2x8x32xf32>
    %16 = vector.shape_cast %15 : vector<2x8x32xf32> to vector<16x32xf32>
    %c0_14 = arith.constant 0 : index
    %c0_15 = arith.constant 0 : index
    %c0_16 = arith.constant 0 : index
    %17 = vector.load %arg2[%c0_14, %c0_15, %c0_16] : memref<2x8x32xf32, #tpu.memory_space<vmem>>, vector<2x8x32xf32>
    %18 = vector.shape_cast %17 : vector<2x8x32xf32> to vector<16x32xf32>
    %c0_17 = arith.constant 0 : index
    %c0_18 = arith.constant 0 : index
    %19 = vector.load %arg4[%c0_17, %c0_18] : memref<32x32xf32, #tpu.memory_space<vmem>>, vector<32x32xf32>
    %cst_19 = arith.constant dense<0.000000e+00> : vector<16x32xf32>
    %20 = tpu.matmul %18, %19, %cst_19 {dimension_numbers = #tpu.dot_dimension_numbers<[1], [0], [0], [1], [0, 0, 1, 1], [], []>} : vector<16x32xf32>, vector<32x32xf32>, vector<16x32xf32> -> vector<16x32xf32>
    %21 = vector.shape_cast %20 : vector<16x32xf32> to vector<2x8x32xf32>
    %c0_20 = arith.constant 0 : index
    %c0_21 = arith.constant 0 : index
    %22 = vector.load %arg5[%c0_20, %c0_21] : memref<32x32xf32, #tpu.memory_space<vmem>>, vector<32x32xf32>
    %cst_22 = arith.constant dense<0.000000e+00> : vector<16x32xf32>
    %23 = tpu.matmul %18, %22, %cst_22 {dimension_numbers = #tpu.dot_dimension_numbers<[1], [0], [0], [1], [0, 0, 1, 1], [], []>} : vector<16x32xf32>, vector<32x32xf32>, vector<16x32xf32> -> vector<16x32xf32>
    %24 = vector.shape_cast %23 : vector<16x32xf32> to vector<2x8x32xf32>
    %c0_23 = arith.constant 0 : index
    %c0_24 = arith.constant 0 : index
    %25 = vector.load %arg6[%c0_23, %c0_24] : memref<32x32xf32, #tpu.memory_space<vmem>>, vector<32x32xf32>
    %cst_25 = arith.constant dense<0.000000e+00> : vector<16x32xf32>
    %26 = tpu.matmul %18, %25, %cst_25 {dimension_numbers = #tpu.dot_dimension_numbers<[1], [0], [0], [1], [0, 0, 1, 1], [], []>} : vector<16x32xf32>, vector<32x32xf32>, vector<16x32xf32> -> vector<16x32xf32>
    %27 = vector.shape_cast %26 : vector<16x32xf32> to vector<2x8x32xf32>
    "tpu.trace_start"() <{level = 10 : i32, message = "bqd,bkd->bqk"}> : () -> ()
    %cst_26 = arith.constant dense<0.000000e+00> : vector<2x8x8xf32>
    %28 = tpu.matmul %21, %24, %cst_26 {dimension_numbers = #tpu.dot_dimension_numbers<[2], [2], [1], [1], [0, 0, 0, 1, 1, 1], [0], [0]>} : vector<2x8x32xf32>, vector<2x8x32xf32>, vector<2x8x8xf32> -> vector<2x8x8xf32>
    "tpu.trace_stop"() : () -> ()
    %cst_27 = arith.constant 0.176776692 : f32
    %29 = vector.broadcast %cst_27 : f32 to vector<2x8x8xf32>
    %30 = arith.mulf %28, %29 : vector<2x8x8xf32>
    %cst_28 = arith.constant dense<0xFF800000> : vector<2x8xf32>
    %31 = vector.multi_reduction <maximumf>, %30, %cst_28 [2] : vector<2x8x8xf32> to vector<2x8xf32>
    %32 = vector.shape_cast %31 : vector<2x8xf32> to vector<2x8x1xf32>
    %33 = vector.broadcast %32 : vector<2x8x1xf32> to vector<2x8x8xf32>
    %34 = arith.subf %30, %33 : vector<2x8x8xf32>
    %35 = math.exp %34 : vector<2x8x8xf32>
    %cst_29 = arith.constant dense<0.000000e+00> : vector<2x8xf32>
    %36 = vector.multi_reduction <add>, %35, %cst_29 [2] : vector<2x8x8xf32> to vector<2x8xf32>
    %37 = vector.shape_cast %36 : vector<2x8xf32> to vector<2x8x1xf32>
    %38 = tpu.reciprocal %37 {approx = true} : vector<2x8x1xf32> -> vector<2x8x1xf32>
    %39 = vector.broadcast %38 : vector<2x8x1xf32> to vector<2x8x8xf32>
    %40 = arith.mulf %35, %39 : vector<2x8x8xf32>
    "tpu.trace_start"() <{level = 10 : i32, message = "bqk,bkd->bqd"}> : () -> ()
    %cst_30 = arith.constant dense<0.000000e+00> : vector<2x8x32xf32>
    %41 = tpu.matmul %40, %27, %cst_30 {dimension_numbers = #tpu.dot_dimension_numbers<[2], [1], [1], [2], [0, 0, 0, 1, 1, 2], [0], [0]>} : vector<2x8x8xf32>, vector<2x8x32xf32>, vector<2x8x32xf32> -> vector<2x8x32xf32>
    "tpu.trace_stop"() : () -> ()
    %42 = vector.shape_cast %41 : vector<2x8x32xf32> to vector<16x32xf32>
    %c0_31 = arith.constant 0 : index
    %c0_32 = arith.constant 0 : index
    %43 = vector.load %arg7[%c0_31, %c0_32] : memref<32x32xf32, #tpu.memory_space<vmem>>, vector<32x32xf32>
    %cst_33 = arith.constant dense<0.000000e+00> : vector<16x32xf32>
    %44 = tpu.matmul %42, %43, %cst_33 {dimension_numbers = #tpu.dot_dimension_numbers<[1], [0], [0], [1], [0, 0, 1, 1], [], []>} : vector<16x32xf32>, vector<32x32xf32>, vector<16x32xf32> -> vector<16x32xf32>
    %45 = arith.addf %18, %44 : vector<16x32xf32>
    %cst_34 = arith.constant dense<0.000000e+00> : vector<16xf32>
    %46 = vector.multi_reduction <add>, %45, %cst_34 [1] : vector<16x32xf32> to vector<16xf32>
    %47 = vector.shape_cast %46 : vector<16xf32> to vector<16x1xf32>
    %cst_35 = arith.constant 3.200000e+01 : f32
    %48 = vector.broadcast %cst_35 : f32 to vector<16x1xf32>
    %49 = arith.divf %47, %48 : vector<16x1xf32>
    %50 = vector.broadcast %49 : vector<16x1xf32> to vector<16x32xf32>
    %51 = arith.subf %45, %50 : vector<16x32xf32>
    %52 = arith.mulf %51, %51 : vector<16x32xf32>
    %cst_36 = arith.constant dense<0.000000e+00> : vector<16xf32>
    %53 = vector.multi_reduction <add>, %52, %cst_36 [1] : vector<16x32xf32> to vector<16xf32>
    %54 = vector.shape_cast %53 : vector<16xf32> to vector<16x1xf32>
    %cst_37 = arith.constant 3.200000e+01 : f32
    %55 = vector.broadcast %cst_37 : f32 to vector<16x1xf32>
    %56 = arith.divf %54, %55 : vector<16x1xf32>
    %57 = vector.broadcast %49 : vector<16x1xf32> to vector<16x32xf32>
    %58 = arith.subf %45, %57 : vector<16x32xf32>
    %cst_38 = arith.constant 9.99999974E-6 : f32
    %59 = vector.broadcast %cst_38 : f32 to vector<16x1xf32>
    %60 = arith.addf %56, %59 : vector<16x1xf32>
    %61 = math.rsqrt %60 : vector<16x1xf32>
    %62 = vector.broadcast %61 : vector<16x1xf32> to vector<16x32xf32>
    %63 = arith.mulf %58, %62 : vector<16x32xf32>
    %64 = vector.broadcast %0 : vector<1x32xf32> to vector<16x32xf32>
    %65 = arith.mulf %63, %64 : vector<16x32xf32>
    %66 = vector.broadcast %1 : vector<1x32xf32> to vector<16x32xf32>
    %67 = arith.addf %65, %66 : vector<16x32xf32>
    %c0_39 = arith.constant 0 : index
    %c0_40 = arith.constant 0 : index
    %68 = vector.load %arg8[%c0_39, %c0_40] : memref<32x32xf32, #tpu.memory_space<vmem>>, vector<32x32xf32>
    %cst_41 = arith.constant dense<0.000000e+00> : vector<16x32xf32>
    %69 = tpu.matmul %67, %68, %cst_41 {dimension_numbers = #tpu.dot_dimension_numbers<[1], [0], [0], [1], [0, 0, 1, 1], [], []>} : vector<16x32xf32>, vector<32x32xf32>, vector<16x32xf32> -> vector<16x32xf32>
    %70 = vector.shape_cast %69 : vector<16x32xf32> to vector<2x8x32xf32>
    %c0_42 = arith.constant 0 : index
    %c0_43 = arith.constant 0 : index
    %71 = vector.load %arg9[%c0_42, %c0_43] : memref<32x32xf32, #tpu.memory_space<vmem>>, vector<32x32xf32>
    %cst_44 = arith.constant dense<0.000000e+00> : vector<16x32xf32>
    %72 = tpu.matmul %16, %71, %cst_44 {dimension_numbers = #tpu.dot_dimension_numbers<[1], [0], [0], [1], [0, 0, 1, 1], [], []>} : vector<16x32xf32>, vector<32x32xf32>, vector<16x32xf32> -> vector<16x32xf32>
    %73 = vector.shape_cast %72 : vector<16x32xf32> to vector<2x8x32xf32>
    %c0_45 = arith.constant 0 : index
    %c0_46 = arith.constant 0 : index
    %74 = vector.load %arg10[%c0_45, %c0_46] : memref<32x32xf32, #tpu.memory_space<vmem>>, vector<32x32xf32>
    %cst_47 = arith.constant dense<0.000000e+00> : vector<16x32xf32>
    %75 = tpu.matmul %16, %74, %cst_47 {dimension_numbers = #tpu.dot_dimension_numbers<[1], [0], [0], [1], [0, 0, 1, 1], [], []>} : vector<16x32xf32>, vector<32x32xf32>, vector<16x32xf32> -> vector<16x32xf32>
    %76 = vector.shape_cast %75 : vector<16x32xf32> to vector<2x8x32xf32>
    "tpu.trace_start"() <{level = 10 : i32, message = "bqd,bkd->bqk"}> : () -> ()
    %cst_48 = arith.constant dense<0.000000e+00> : vector<2x8x8xf32>
    %77 = tpu.matmul %70, %73, %cst_48 {dimension_numbers = #tpu.dot_dimension_numbers<[2], [2], [1], [1], [0, 0, 0, 1, 1, 1], [0], [0]>} : vector<2x8x32xf32>, vector<2x8x32xf32>, vector<2x8x8xf32> -> vector<2x8x8xf32>
    "tpu.trace_stop"() : () -> ()
    %cst_49 = arith.constant 0.176776692 : f32
    %78 = vector.broadcast %cst_49 : f32 to vector<2x8x8xf32>
    %79 = arith.mulf %77, %78 : vector<2x8x8xf32>
    %c0_50 = arith.constant 0 : index
    %c0_51 = arith.constant 0 : index
    %c0_52 = arith.constant 0 : index
    %80 = vector.load %arg3[%c0_50, %c0_51, %c0_52] : memref<2x1x8xf32, #tpu.memory_space<vmem>>, vector<2x1x8xf32>
    %81 = vector.broadcast %80 : vector<2x1x8xf32> to vector<2x8x8xf32>
    %82 = arith.addf %79, %81 : vector<2x8x8xf32>
    %cst_53 = arith.constant dense<0xFF800000> : vector<2x8xf32>
    %83 = vector.multi_reduction <maximumf>, %82, %cst_53 [2] : vector<2x8x8xf32> to vector<2x8xf32>
    %84 = vector.shape_cast %83 : vector<2x8xf32> to vector<2x8x1xf32>
    %85 = vector.broadcast %84 : vector<2x8x1xf32> to vector<2x8x8xf32>
    %86 = arith.subf %82, %85 : vector<2x8x8xf32>
    %87 = math.exp %86 : vector<2x8x8xf32>
    %cst_54 = arith.constant dense<0.000000e+00> : vector<2x8xf32>
    %88 = vector.multi_reduction <add>, %87, %cst_54 [2] : vector<2x8x8xf32> to vector<2x8xf32>
    %89 = vector.shape_cast %88 : vector<2x8xf32> to vector<2x8x1xf32>
    %90 = vector.broadcast %89 : vector<2x8x1xf32> to vector<2x8x8xf32>
    %91 = arith.divf %87, %90 : vector<2x8x8xf32>
    "tpu.trace_start"() <{level = 10 : i32, message = "bqk,bkd->bqd"}> : () -> ()
    %cst_55 = arith.constant dense<0.000000e+00> : vector<2x8x32xf32>
    %92 = tpu.matmul %91, %76, %cst_55 {dimension_numbers = #tpu.dot_dimension_numbers<[2], [1], [1], [2], [0, 0, 0, 1, 1, 2], [0], [0]>} : vector<2x8x8xf32>, vector<2x8x32xf32>, vector<2x8x32xf32> -> vector<2x8x32xf32>
    "tpu.trace_stop"() : () -> ()
    %93 = vector.shape_cast %92 : vector<2x8x32xf32> to vector<16x32xf32>
    %c0_56 = arith.constant 0 : index
    %c0_57 = arith.constant 0 : index
    %94 = vector.load %arg11[%c0_56, %c0_57] : memref<32x32xf32, #tpu.memory_space<vmem>>, vector<32x32xf32>
    %cst_58 = arith.constant dense<0.000000e+00> : vector<16x32xf32>
    %95 = tpu.matmul %93, %94, %cst_58 {dimension_numbers = #tpu.dot_dimension_numbers<[1], [0], [0], [1], [0, 0, 1, 1], [], []>} : vector<16x32xf32>, vector<32x32xf32>, vector<16x32xf32> -> vector<16x32xf32>
    %96 = arith.addf %67, %95 : vector<16x32xf32>
    %cst_59 = arith.constant dense<0.000000e+00> : vector<16xf32>
    %97 = vector.multi_reduction <add>, %96, %cst_59 [1] : vector<16x32xf32> to vector<16xf32>
    %98 = vector.shape_cast %97 : vector<16xf32> to vector<16x1xf32>
    %cst_60 = arith.constant 3.200000e+01 : f32
    %99 = vector.broadcast %cst_60 : f32 to vector<16x1xf32>
    %100 = arith.divf %98, %99 : vector<16x1xf32>
    %101 = vector.broadcast %100 : vector<16x1xf32> to vector<16x32xf32>
    %102 = arith.subf %96, %101 : vector<16x32xf32>
    %103 = arith.mulf %102, %102 : vector<16x32xf32>
    %cst_61 = arith.constant dense<0.000000e+00> : vector<16xf32>
    %104 = vector.multi_reduction <add>, %103, %cst_61 [1] : vector<16x32xf32> to vector<16xf32>
    %105 = vector.shape_cast %104 : vector<16xf32> to vector<16x1xf32>
    %cst_62 = arith.constant 3.200000e+01 : f32
    %106 = vector.broadcast %cst_62 : f32 to vector<16x1xf32>
    %107 = arith.divf %105, %106 : vector<16x1xf32>
    %108 = vector.broadcast %100 : vector<16x1xf32> to vector<16x32xf32>
    %109 = arith.subf %96, %108 : vector<16x32xf32>
    %cst_63 = arith.constant 9.99999974E-6 : f32
    %110 = vector.broadcast %cst_63 : f32 to vector<16x1xf32>
    %111 = arith.addf %107, %110 : vector<16x1xf32>
    %112 = math.rsqrt %111 : vector<16x1xf32>
    %113 = vector.broadcast %112 : vector<16x1xf32> to vector<16x32xf32>
    %114 = arith.mulf %109, %113 : vector<16x32xf32>
    %115 = vector.broadcast %2 : vector<1x32xf32> to vector<16x32xf32>
    %116 = arith.mulf %114, %115 : vector<16x32xf32>
    %117 = vector.broadcast %3 : vector<1x32xf32> to vector<16x32xf32>
    %118 = arith.addf %116, %117 : vector<16x32xf32>
    %c0_64 = arith.constant 0 : index
    %c0_65 = arith.constant 0 : index
    %119 = vector.load %arg12[%c0_64, %c0_65] : memref<32x64xf32, #tpu.memory_space<vmem>>, vector<32x64xf32>
    %cst_66 = arith.constant dense<0.000000e+00> : vector<16x64xf32>
    %120 = tpu.matmul %118, %119, %cst_66 {dimension_numbers = #tpu.dot_dimension_numbers<[1], [0], [0], [1], [0, 0, 1, 1], [], []>} : vector<16x32xf32>, vector<32x64xf32>, vector<16x64xf32> -> vector<16x64xf32>
    %121 = vector.broadcast %6 : vector<1x64xf32> to vector<16x64xf32>
    %122 = arith.addf %120, %121 : vector<16x64xf32>
    %cst_67 = arith.constant 0.000000e+00 : f32
    %123 = vector.broadcast %cst_67 : f32 to vector<16x64xf32>
    %124 = arith.maximumf %122, %123 : vector<16x64xf32>
    %c0_68 = arith.constant 0 : index
    %c0_69 = arith.constant 0 : index
    %125 = vector.load %arg13[%c0_68, %c0_69] : memref<64x32xf32, #tpu.memory_space<vmem>>, vector<64x32xf32>
    %cst_70 = arith.constant dense<0.000000e+00> : vector<16x32xf32>
    %126 = tpu.matmul %124, %125, %cst_70 {dimension_numbers = #tpu.dot_dimension_numbers<[1], [0], [0], [1], [0, 0, 1, 1], [], []>} : vector<16x64xf32>, vector<64x32xf32>, vector<16x32xf32> -> vector<16x32xf32>
    %127 = vector.broadcast %7 : vector<1x32xf32> to vector<16x32xf32>
    %128 = arith.addf %126, %127 : vector<16x32xf32>
    %129 = arith.addf %118, %128 : vector<16x32xf32>
    %cst_71 = arith.constant dense<0.000000e+00> : vector<16xf32>
    %130 = vector.multi_reduction <add>, %129, %cst_71 [1] : vector<16x32xf32> to vector<16xf32>
    %131 = vector.shape_cast %130 : vector<16xf32> to vector<16x1xf32>
    %cst_72 = arith.constant 3.200000e+01 : f32
    %132 = vector.broadcast %cst_72 : f32 to vector<16x1xf32>
    %133 = arith.divf %131, %132 : vector<16x1xf32>
    %134 = vector.broadcast %133 : vector<16x1xf32> to vector<16x32xf32>
    %135 = arith.subf %129, %134 : vector<16x32xf32>
    %136 = arith.mulf %135, %135 : vector<16x32xf32>
    %cst_73 = arith.constant dense<0.000000e+00> : vector<16xf32>
    %137 = vector.multi_reduction <add>, %136, %cst_73 [1] : vector<16x32xf32> to vector<16xf32>
    %138 = vector.shape_cast %137 : vector<16xf32> to vector<16x1xf32>
    %cst_74 = arith.constant 3.200000e+01 : f32
    %139 = vector.broadcast %cst_74 : f32 to vector<16x1xf32>
    %140 = arith.divf %138, %139 : vector<16x1xf32>
    %141 = vector.broadcast %133 : vector<16x1xf32> to vector<16x32xf32>
    %142 = arith.subf %129, %141 : vector<16x32xf32>
    %cst_75 = arith.constant 9.99999974E-6 : f32
    %143 = vector.broadcast %cst_75 : f32 to vector<16x1xf32>
    %144 = arith.addf %140, %143 : vector<16x1xf32>
    %145 = math.rsqrt %144 : vector<16x1xf32>
    %146 = vector.broadcast %145 : vector<16x1xf32> to vector<16x32xf32>
    %147 = arith.mulf %142, %146 : vector<16x32xf32>
    %148 = vector.broadcast %4 : vector<1x32xf32> to vector<16x32xf32>
    %149 = arith.mulf %147, %148 : vector<16x32xf32>
    %150 = vector.broadcast %5 : vector<1x32xf32> to vector<16x32xf32>
    %151 = arith.addf %149, %150 : vector<16x32xf32>
    %c0_76 = arith.constant 0 : index
    %c0_77 = arith.constant 0 : index
    %152 = vector.load %arg14[%c0_76, %c0_77] : memref<32x128xf32, #tpu.memory_space<vmem>>, vector<32x128xf32>
    %cst_78 = arith.constant dense<0.000000e+00> : vector<16x128xf32>
    %153 = tpu.matmul %151, %152, %cst_78 {dimension_numbers = #tpu.dot_dimension_numbers<[1], [0], [0], [1], [0, 0, 1, 1], [], []>} : vector<16x32xf32>, vector<32x128xf32>, vector<16x128xf32> -> vector<16x128xf32>
    %154 = vector.broadcast %8 : vector<1x128xf32> to vector<16x128xf32>
    %155 = arith.addf %153, %154 : vector<16x128xf32>
    %cst_79 = arith.constant -3.14159274 : f32
    %cst_80 = arith.constant 3.14159274 : f32
    %156 = vector.broadcast %cst_79 : f32 to vector<16x128xf32>
    %157 = arith.maximumf %156, %155 : vector<16x128xf32>
    %158 = vector.broadcast %cst_80 : f32 to vector<16x128xf32>
    %159 = arith.minimumf %158, %157 : vector<16x128xf32>
    %160 = vector.shape_cast %159 : vector<16x128xf32> to vector<2x8x128xf32>
    %c0_81 = arith.constant 0 : index
    %c0_82 = arith.constant 0 : index
    %c0_83 = arith.constant 0 : index
    %161 = vector.load %arg16[%c0_81, %c0_82, %c0_83] : memref<2x8x128xf32, #tpu.memory_space<vmem>>, vector<2x8x128xf32>
    tpu.vector_store %arg16[%c0_81, %c0_82, %c0_83], %160 {strides = array<i32>} : memref<2x8x128xf32, #tpu.memory_space<vmem>>, vector<2x8x128xf32>,
    %cst_84 = arith.constant 0.000000e+00 : f32
    %162 = vector.broadcast %cst_84 : f32 to vector<2x8x128xf32>
    %c0_85 = arith.constant 0 : index
    %c0_86 = arith.constant 0 : index
    %c0_87 = arith.constant 0 : index
    %163 = vector.load %arg17[%c0_85, %c0_86, %c0_87] : memref<2x8x128xf32, #tpu.memory_space<vmem>>, vector<2x8x128xf32>
    tpu.vector_store %arg17[%c0_85, %c0_86, %c0_87], %162 {strides = array<i32>} : memref<2x8x128xf32, #tpu.memory_space<vmem>>, vector<2x8x128xf32>,
    %c0_88 = arith.constant 0 : index
    %c0_89 = arith.constant 0 : index
    %c0_90 = arith.constant 0 : index
    %164 = vector.load %arg17[%c0_88, %c0_89, %c0_90] : memref<2x8x128xf32, #tpu.memory_space<vmem>>, vector<2x8x8xf32>
    tpu.vector_store %arg17[%c0_88, %c0_89, %c0_90], %91 {strides = array<i32>} : memref<2x8x128xf32, #tpu.memory_space<vmem>>, vector<2x8x8xf32>,
    return
  }
}

</mosaic_0001>

<bundles_post_ra>
// kernel: generator_forward.1
= control target key start
LH: loop header
LB: loop body
LE: loop exit
PB: predicated region body
PF: predicated region fallthrough
CT: control target
= control target key end

     0   :  { %s1411_s0 = inlined_call_operand.vmem [shape: f32[2,8,32], index: 0, kind: input, shape index: {}]   ;;  %s1412_s1 = inlined_call_operand.vmem [shape: f32[8,32], index: 1, kind: input, shape index: {}]   ;;  %s1413_s2 = inlined_call_operand.vmem [shape: f32[2,8,32], index: 2, kind: input, shape index: {}]   ;;  %s1414_s3 = inlined_call_operand.vmem [shape: f32[2,1,8], index: 3, kind: input, shape index: {}]   ;;  %s1415_s4 = inlined_call_operand.vmem [shape: f32[32,32], index: 4, kind: input, shape index: {}]   ;;  %s1416_s5 = inlined_call_operand.vmem [shape: f32[32,32], index: 5, kind: input, shape index: {}]   ;;  %s1417_s6 = inlined_call_operand.vmem [shape: f32[32,32], index: 6, kind: input, shape index: {}]   ;;  %s1418_s7 = inlined_call_operand.vmem [shape: f32[32,32], index: 7, kind: input, shape index: {}]   ;;  %s1419_s8 = inlined_call_operand.vmem [shape: f32[32,32], index: 8, kind: input, shape index: {}]   ;;  %s1420_s9 = inlined_call_operand.vmem [shape: f32[32,32], index: 9, kind: input, shape index: {}]   ;;  %s1421_s10 = inlined_call_operand.vmem [shape: f32[32,32], index: 10, kind: input, shape index: {}]   ;;  %s1422_s11 = inlined_call_operand.vmem [shape: f32[32,32], index: 11, kind: input, shape index: {}]   ;;  %s1423_s12 = inlined_call_operand.vmem [shape: f32[32,64], index: 12, kind: input, shape index: {}]   ;;  %s1424_s13 = inlined_call_operand.vmem [shape: f32[64,32], index: 13, kind: input, shape index: {}]   ;;  %s1425_s14 = inlined_call_operand.vmem [shape: f32[32,128], index: 14, kind: input, shape index: {}]   ;;  %s1426_s15 = inlined_call_operand.vmem [shape: f32[16,128], index: 15, kind: input, shape index: {}]   ;;  %s1427_s16 = inlined_call_operand.vmem [shape: f32[2,8,128], index: 16, kind: output, shape index: {0}]   ;;  %s1428_s17 = inlined_call_operand.hbm [shape: f32[2,8,128], index: 17, kind: output, shape index: {1}]  }
   0x1   :  { %1430 = sst [smem:[#allocation5_spill]] %s1411_s0 }
   0x2   :  { %1431 = sst [smem:[#allocation6_spill]] %s1412_s1 }
   0x3   :  { %v111_v0 = vld [vmem:[%s1416_s5 + $0x18] sm:$0xff]  ;;  %v110_v1 = vld [vmem:[%s1416_s5 + $0x10] sm:$0xff]  ;;  %v109_v4 = vld [vmem:[%s1416_s5 + $0x8] sm:$0xff]  ;;  %vm78_vm0 = vcmask 261120  }
   0x4   :  { %v77_v2 = vld [vmem:[%s1415_s4 + $0x18] sm:$0xff]  ;;  %124 = vmatpush.msra.mxu1 %v111_v0  ;;  %v76_v3 = vld [vmem:[%s1415_s4 + $0x10] sm:$0xff]  ;;  %v108_v5 = vld [vmem:[%s1416_s5] sm:$0xff] }
   0x5   :  { %97 = vmatpush.msra.mxu0 %v77_v2  ;;  %v75_v6 = vld [vmem:[%s1415_s4 + $0x8] sm:$0xff]  ;;  %v1133_v7 = vld [vmem:[%s1413_s2] sm:$0xff] }
   0x6   :  { %125 = vmatpush.msra.mxu1 %v110_v1  ;;  %v74_v8 = vld [vmem:[%s1415_s4] sm:$0xff] }
   0x7   :  { %98 = vmatpush.msra.mxu0 %v76_v3 }
   0x8   :  { %126 = vmatpush.msra.mxu1 %v109_v4 }
   0x9   :  { %99 = vmatpush.msra.mxu0 %v75_v6 }
   0xa   :  { %127 = vmatpush.msra.mxu1 %v108_v5 }
   0xb   :  { %100 = vmatpush.msra.mxu0 %v74_v8 }
   0xc   :  { %23 = vsyncpa [#allocation3], 0  ;;  %908 = vmatmul.msk.f32.vlgmr.msra.gmra.mxu1 %vm78_vm0, %v1133_v7  ;;  %906 = vmatmul.msk.f32.vlgmr.msra.gmra.mxu0 %vm78_vm0, %v1133_v7  ;;  %v1145_v9 = vld [vmem:[%s1413_s2 + $0x8] sm:$0xff]  ;;  %v138_v14 = vld [vmem:[%s1417_s6 + $0x18] sm:$0xff]  ;;  %vm216_vm1 = vcmask 64512   ;;  %v1014_v54 = vmov 32.0  }
   0xd   :  { %v137_v15 = vld [vmem:[%s1417_s6 + $0x10] sm:$0xff]  ;;  %151 = vmatpush.msra.mxu2 %v138_v14  ;;  %v136_v22 = vld [vmem:[%s1417_s6 + $0x8] sm:$0xff]  ;;  %v135_v23 = vld [vmem:[%s1417_s6] sm:$0xff]  ;;  %s1432_s0 = sld [smem:[#allocation5_spill]]  ;;  %s892_s24 = sshll.u32 %s1428_s17, 4  ;;  %s893_s24 = int_to_ptr.hbm [resolvable:$true] %s892_s24 }
   0xe   :  { %v288_v36 = vld [vmem:[%s1418_s7 + $0x18] sm:$0xff]  ;;  %v287_v37 = vld [vmem:[%s1418_s7 + $0x10] sm:$0xff]  ;;  %v286_v38 = vld [vmem:[%s1418_s7 + $0x8] sm:$0xff]  ;;  %s1433_s21 = sld [smem:[#allocation6_spill]]  ;;  %s1017_s25 = smov 128  }
   0xf   :  { %152 = vmatpush.msra.mxu2 %v137_v15  ;;  %v285_v45 = vld [vmem:[%s1418_s7] sm:$0xff]  ;;  %v412_v8 = vld [vmem:[%s1420_s9 + $0x10] sm:$0xff]  ;;  %s1018_s7 = smov 8  }
  0x10   :  { %v410_v15 = vld [vmem:[%s1420_s9] sm:$0xff] }
  0x11   :  { %153 = vmatpush.msra.mxu2 %v136_v22 }
  0x13   :  { %154 = vmatpush.msra.mxu2 %v135_v23 }
  0x14   :  { %909 = vmatmul.msk.f32.gmra.mxu1 %vm78_vm0, %v1145_v9  ;;  %907 = vmatmul.msk.f32.gmra.mxu0 %vm78_vm0, %v1145_v9  ;;  %v69_v14 = vld [vmem:[%s1433_s21] sm:$0xff] }
  0x15   :  { %910 = vmatmul.msk.f32.vlgmr.msra.gmra.mxu2 %vm78_vm0, %v1133_v7 }
  0x1d   :  { %911 = vmatmul.msk.f32.gmra.mxu2 %vm78_vm0, %v1145_v9 }
  0x89   :  { %v129_v10 = vpop.f32.mrf.mxu1  ;;  %v102_v11 = vpop.f32.mrf.mxu0 }
  0x8a   :  { %912 = vmatpush.xpose.msk.msrb.mxu1 %vm78_vm0, %v129_v10  ;;  %v65_v10 = vld [vmem:[%s1432_s0] sm:$0xff] }
  0x8d   :  { %913 = vmatmul.msk.f32.vlgmr.msrb.gmra.mxu1 %vm78_vm0, %v102_v11  ;;  %v411_v11 = vld [vmem:[%s1420_s9 + $0x8] sm:$0xff] }
  0x8e   :  { %307 = vmatpush.msra.mxu1 %v288_v36  ;;  %v947_v36 = vld [vmem:[%s1426_s15] ss:$0 sm:$0xff] }
  0x90   :  { %308 = vmatpush.msra.mxu1 %v287_v37 }
  0x91   :  { %v132_v12 = vpop.f32.mrf.mxu1  ;;  %v105_v13 = vpop.f32.mrf.mxu0 }
  0x92   :  { %914 = vmatpush.xpose.msk.msra.mxu3 %vm78_vm0, %v132_v12  ;;  %309 = vmatpush.msra.mxu1 %v286_v38  ;;  %v67_v12 = vmul.f32 5.656854, %v65_v10 }
  0x94   :  { %310 = vmatpush.msra.mxu1 %v285_v45 }
  0x95   :  { %915 = vmatmul.msk.f32.vlgmr.msra.gmra.mxu3 %vm78_vm0, %v105_v13  ;;  %v379_v13 = vld [vmem:[%s1419_s8 + $0x10] sm:$0xff] }
  0x98   :  { %v156_v34 = vpop.f32.mrf.mxu2 }
  0x99   :  { %257 = vmatpush.msrb.mxu3 %v156_v34 }
  0xa0   :  { %v159_v35 = vpop.f32.mrf.mxu2 }
  0xa1   :  { %280 = vmatpush.msrb.mxu0 %v159_v35 }
 0x10a   :  { %v185_v16 = vpop.f32.mrf.mxu1 }
 0x10b   :  { %v214_v17 = vmul.f32 0.17677669, %v185_v16  ;;  %v1229_v16 = vadd.f32 %v69_v14, %v67_v12 }
 0x10d   :  { %v217_v18 = vsel %vm216_vm1, %v214_v17, -inf }
 0x10e   :  { %218 = vmax.xlane.f32.xlu0 %v217_v18  ;;  %v377_v18 = vld [vmem:[%s1419_s8] sm:$0xff] }
 0x118   :  { %v211_v19 = vpop.f32.mrf.mxu3 }
 0x119   :  { %v215_v20 = vmul.f32 0.17677669, %v211_v19  ;;  %v66_v19 = vld [vmem:[%s1432_s0 + $0x8] sm:$0xff] }
 0x11b   :  { %v220_v21 = vsel %vm216_vm1, %v215_v20, -inf }
 0x11c   :  { %221 = vmax.xlane.f32.xlu0 %v220_v21 }
 0x181   :  { %v219_v24 = vpop.xlane.xlu0 %218 }
 0x182   :  { %v223_v25 = vsub.f32 %v214_v17, %v219_v24  ;;  %v378_v17 = vld [vmem:[%s1419_s8 + $0x8] sm:$0xff] }
 0x184   :  { %v225_v26 = vmul.f32 1.442695, %v223_v25 }
 0x186   :  { %958 = vpow2.f32 %v225_v26 }
 0x18c   :  { %v959_v27 = vpop.eup %958 }
 0x18d   :  { %v229_v28 = vsel %vm216_vm1, %v959_v27, 0.0 }
 0x18e   :  { %230 = vadd.xlane.f32.xlu1 %v229_v28 }
 0x18f   :  { %v222_v29 = vpop.xlane.xlu0 %221 }
 0x190   :  { %v224_v30 = vsub.f32 %v215_v20, %v222_v29  ;;  %v68_v20 = vmul.f32 5.656854, %v66_v19  ;;  %v631_v19 = vld [vmem:[%s1422_s11 + $0x18] sm:$0xff] }
 0x192   :  { %v227_v31 = vmul.f32 1.442695, %v224_v30  ;;  %v1242_v22 = vadd.f32 %v69_v14, %v68_v20  ;;  %v630_v20 = vld [vmem:[%s1422_s11 + $0x10] sm:$0xff] }
 0x194   :  { %960 = vpow2.f32 %v227_v31 }
 0x19a   :  { %v961_v32 = vpop.eup %960 }
 0x19b   :  { %v232_v33 = vsel %vm216_vm1, %v961_v32, 0.0 }
 0x19c   :  { %233 = vadd.xlane.f32.xlu1 %v232_v33 }
 0x201   :  { %v231_v39 = vpop.xlane.xlu1 %230 }
 0x202   :  { %962 = vrcp.f32 %v231_v39 }
 0x208   :  { %v963_v40 = vpop.eup %962 }
 0x209   :  { %v237_v41 = vmul.f32 %v963_v40, %v959_v27  ;;  %v948_v40 = vld [vmem:[%s1426_s15 + $0x1] ss:$0 sm:$0xff] }
 0x20b   :  { %916 = vmatmul.msk.f32.vlgmr.msrb.gmra.mxu3 %vm216_vm1, %v237_v41 }
 0x20f   :  { %v234_v42 = vpop.xlane.xlu1 %233 }
 0x210   :  { %964 = vrcp.f32 %v234_v42 }
 0x211   :  { %966 = vrcp.f32 %v1014_v54  ;;  %v949_v54 = vld [vmem:[%s1414_s3] ss:$0 sm:$0xff] }
 0x216   :  { %v965_v43 = vpop.eup %964 }
 0x217   :  { %v238_v44 = vmul.f32 %v965_v43, %v961_v32  ;;  %v967_v55 = vpop.eup %966 }
 0x218   :  { %v327_v56 = vmul.f32 32.0, %v967_v55  ;;  %vm331_vm2 = vweird.f32 %v967_v55 }
 0x219   :  { %917 = vmatmul.msk.f32.vlgmr.msrb.gmra.mxu0 %vm216_vm1, %v238_v44 }
 0x21a   :  { %v328_v57 = vsub.f32 1.0, %v327_v56 }
 0x21c   :  { %v329_v58 = vmul.f32 %v967_v55, %v328_v57 }
 0x21e   :  { %v330_v59 = vadd.f32 %v967_v55, %v329_v58 }
 0x220   :  { %v1195_v60 = vsel %vm331_vm2, %v967_v55, %v330_v59  ;;  %v950_v59 = vld [vmem:[%s1414_s3 + $0x1] ss:$0 sm:$0xff]  ;;  %s1016_s3 = smov [#allocation2]  }
 0x221   :  { %s890_s22 = sshll.u32 %s1016_s3, 4  ;;  %s891_s22 = int_to_ptr.vmem [resolvable:$true] %s890_s22 }
 0x28e   :  { %v259_v46 = vpop.f32.mrf.mxu3 }
 0x28f   :  { %918 = vmatmul.msk.f32.vlgmr.msra.gmra.mxu1 %vm78_vm0, %v259_v46 }
 0x296   :  { %v282_v47 = vpop.f32.mrf.mxu0 }
 0x297   :  { %919 = vmatmul.msk.f32.gmra.mxu1 %vm78_vm0, %v282_v47 }
 0x30c   :  { %v312_v48 = vpop.f32.mrf.mxu1 }
 0x30d   :  { %v318_v49 = vadd.f32 %v312_v48, %v1133_v7  ;;  %v413_v7 = vld [vmem:[%s1420_s9 + $0x18] sm:$0xff] }
 0x30e   :  { %432 = vmatpush.msra.mxu3 %v413_v7 }
 0x30f   :  { %v320_v50 = vsel %vm78_vm0, %v318_v49, 0.0 }
 0x310   :  { %321 = vadd.xlane.f32.xlu2 %v320_v50  ;;  %433 = vmatpush.msra.mxu3 %v412_v8 }
 0x312   :  { %434 = vmatpush.msra.mxu3 %v411_v11 }
 0x314   :  { %v315_v51 = vpop.f32.mrf.mxu1  ;;  %435 = vmatpush.msra.mxu3 %v410_v15 }
 0x315   :  { %v319_v52 = vadd.f32 %v315_v51, %v1145_v9  ;;  %v380_v9 = vld [vmem:[%s1419_s8 + $0x18] sm:$0xff]  ;;  %922 = vmatmul.msk.f32.vlgmr.msra.gmra.mxu3 %vm78_vm0, %v1229_v16 }
 0x316   :  { %399 = vmatpush.msrb.mxu2 %v380_v9 }
 0x317   :  { %v323_v53 = vsel %vm78_vm0, %v319_v52, 0.0 }
 0x318   :  { %324 = vadd.xlane.f32.xlu2 %v323_v53  ;;  %400 = vmatpush.msrb.mxu2 %v379_v13 }
 0x31a   :  { %401 = vmatpush.msrb.mxu2 %v378_v17 }
 0x31c   :  { %402 = vmatpush.msrb.mxu2 %v377_v18 }
 0x31d   :  { %923 = vmatmul.msk.f32.gmra.mxu3 %vm78_vm0, %v1242_v22 }
 0x383   :  { %v322_v61 = vpop.xlane.xlu2 %321 }
 0x384   :  { %v333_v62 = vmul.f32 %v1195_v60, %v322_v61 }
 0x386   :  { %v335_v63 = vsub.f32 %v318_v49, %v333_v62 }
 0x388   :  { %v337_v0 = vmul.f32 %v335_v63, %v335_v63 }
 0x38a   :  { %v339_v1 = vsel %vm78_vm0, %v337_v0, 0.0 }
 0x38b   :  { %340 = vadd.xlane.f32.xlu0 %v339_v1  ;;  %v325_v2 = vpop.xlane.xlu2 %324  ;;  %v446_v1 = vld [vmem:[%s1421_s10 + $0x18] sm:$0xff] }
 0x38c   :  { %v334_v3 = vmul.f32 %v1195_v60, %v325_v2  ;;  %459 = vmatpush.msra.mxu0 %v446_v1  ;;  %v445_v2 = vld [vmem:[%s1421_s10 + $0x10] sm:$0xff] }
 0x38e   :  { %v1200_v4 = vsub.f32 %v319_v52, %v334_v3  ;;  %460 = vmatpush.msra.mxu0 %v445_v2  ;;  %v444_v3 = vld [vmem:[%s1421_s10 + $0x8] sm:$0xff]  ;;  %v715_v2 = vld [vmem:[%s1423_s12 + $0x10] sm:$0xff] }
 0x390   :  { %v338_v5 = vmul.f32 %v1200_v4, %v1200_v4  ;;  %461 = vmatpush.msra.mxu0 %v444_v3  ;;  %v714_v3 = vld [vmem:[%s1423_s12 + $0x8] sm:$0xff] }
 0x392   :  { %v342_v6 = vsel %vm78_vm0, %v338_v5, 0.0 }
 0x393   :  { %343 = vadd.xlane.f32.xlu1 %v342_v6 }
 0x398   :  { %v437_v50 = vpop.f32.mrf.mxu3 }
 0x399   :  { %926 = vmatpush.xpose.msk.msrb.mxu1 %vm78_vm0, %v437_v50 }
 0x39d   :  { %650 = vmatpush.msra.mxu1 %v631_v19 }
 0x39f   :  { %651 = vmatpush.msra.mxu1 %v630_v20 }
 0x3a0   :  { %v440_v51 = vpop.f32.mrf.mxu3 }
 0x3a1   :  { %928 = vmatpush.xpose.msk.msra.mxu2 %vm78_vm0, %v440_v51 }
 0x3fe   :  { %v341_v21 = vpop.xlane.xlu0 %340 }
 0x3ff   :  { %v345_v23 = vmul.f32 %v341_v21, %v1195_v60  ;;  %v629_v21 = vld [vmem:[%s1422_s11 + $0x8] sm:$0xff] }
 0x400   :  { %652 = vmatpush.msra.mxu1 %v629_v21 }
 0x401   :  { %v347_v24 = vadd.f32 1e-05, %v345_v23 }
 0x403   :  { %968 = vrsqrt.f32 %v347_v24  ;;  %vm355_vm4 = vweird.f32 %v347_v24 }
 0x406   :  { %v344_v25 = vpop.xlane.xlu1 %343 }
 0x407   :  { %v346_v26 = vmul.f32 %v344_v25, %v1195_v60 }
 0x409   :  { %v969_v27 = vpop.eup %968  ;;  %v348_v28 = vadd.f32 1e-05, %v346_v26 }
 0x40a   :  { %v350_v29 = vmul.f32 %v969_v27, %v347_v24  ;;  %vm356_vm3 = vweird.f32 %v969_v27 }
 0x40b   :  { %970 = vrsqrt.f32 %v348_v28  ;;  %vm357_vm5 = vmor %vm355_vm4, %vm356_vm3  ;;  %vm365_vm7 = vweird.f32 %v348_v28 }
 0x40c   :  { %v351_v30 = vmul.f32 %v969_v27, %v350_v29 }
 0x40e   :  { %v352_v31 = vmul.f32 0.5, %v351_v30 }
 0x410   :  { %v353_v32 = vsub.f32 1.5, %v352_v31 }
 0x411   :  { %v971_v33 = vpop.eup %970 }
 0x412   :  { %v354_v34 = vmul.f32 %v969_v27, %v353_v32  ;;  %v360_v35 = vmul.f32 %v971_v33, %v348_v28  ;;  %vm366_vm6 = vweird.f32 %v971_v33 }
 0x413   :  { %vm367_vm8 = vmor %vm365_vm7, %vm366_vm6 }
 0x414   :  { %v358_v37 = vsel %vm357_vm5, %v969_v27, %v354_v34  ;;  %v361_v38 = vmul.f32 %v971_v33, %v360_v35 }
 0x415   :  { %v369_v39 = vmul.f32 %v358_v37, %v335_v63 }
 0x416   :  { %v362_v41 = vmul.f32 0.5, %v361_v38 }
 0x417   :  { %v372_v42 = vmul.f32 %v947_v36, %v369_v39 }
 0x418   :  { %v363_v43 = vsub.f32 1.5, %v362_v41 }
 0x419   :  { %v1254_v44 = vadd.f32 %v948_v40, %v372_v42 }
 0x41a   :  { %v364_v45 = vmul.f32 %v971_v33, %v363_v43 }
 0x41b   :  { %920 = vmatmul.msk.f32.vlgmr.msrb.gmra.mxu2 %vm78_vm0, %v1254_v44 }
 0x41c   :  { %v368_v46 = vsel %vm367_vm8, %v971_v33, %v364_v45  ;;  %vm758_vm8 = vcmask 523264  }
 0x41d   :  { %v370_v47 = vmul.f32 %v368_v46, %v1200_v4  ;;  %v443_v4 = vld [vmem:[%s1421_s10] sm:$0xff] }
 0x41e   :  { %462 = vmatpush.msra.mxu0 %v443_v4  ;;  %v628_v46 = vld [vmem:[%s1422_s11] sm:$0xff] }
 0x41f   :  { %v373_v48 = vmul.f32 %v947_v36, %v370_v47  ;;  %924 = vmatmul.msk.f32.vlgmr.msra.gmra.mxu0 %vm78_vm0, %v1229_v16  ;;  %v1015_v16 = vmov 0.0   ;;  %653 = vmatpush.msra.mxu1 %v628_v46  ;;  %v713_v4 = vld [vmem:[%s1423_s12] sm:$0xff] }
 0x420   :  { %880 = vst [vmem:[#allocation2] sm:$0xff] %v1015_v16 }
 0x421   :  { %v1259_v49 = vadd.f32 %v948_v40, %v373_v48  ;;  %881 = vst [vmem:[#allocation2 + $0x8] sm:$0xff] %v1015_v16  ;;  %v752_v16 = vld [vmem:[%s1424_s13 + $0x18] sm:$0xff] }
 0x423   :  { %921 = vmatmul.msk.f32.gmra.mxu2 %vm78_vm0, %v1259_v49 }
 0x427   :  { %925 = vmatmul.msk.f32.gmra.mxu0 %vm78_vm0, %v1242_v22 }
 0x49c   :  { %v464_v15 = vpop.f32.mrf.mxu0 }
 0x49d   :  { %600 = vmatpush.msrb.mxu3 %v464_v15 }
 0x49e   :  { %v404_v52 = vpop.f32.mrf.mxu2 }
 0x49f   :  { %927 = vmatmul.msk.f32.vlgmr.msrb.gmra.mxu1 %vm78_vm0, %v404_v52 }
 0x4a4   :  { %v467_v17 = vpop.f32.mrf.mxu0 }
 0x4a5   :  { %623 = vmatpush.msrb.mxu0 %v467_v17 }
 0x4a6   :  { %v407_v53 = vpop.f32.mrf.mxu2 }
 0x4a7   :  { %929 = vmatmul.msk.f32.vlgmr.msra.gmra.mxu2 %vm78_vm0, %v407_v53 }
 0x51c   :  { %v493_v55 = vpop.f32.mrf.mxu1 }
 0x51d   :  { %v522_v56 = vmul.f32 0.17677669, %v493_v55 }
 0x51f   :  { %v532_v57 = vadd.f32 %v949_v54, %v522_v56 }
 0x521   :  { %v534_v58 = vsel %vm216_vm1, %v532_v57, -inf }
 0x522   :  { %535 = vmax.xlane.f32.xlu2 %v534_v58 }
 0x52a   :  { %v519_v61 = vpop.f32.mrf.mxu2 }
 0x52b   :  { %v523_v62 = vmul.f32 0.17677669, %v519_v61 }
 0x52d   :  { %v533_v63 = vadd.f32 %v950_v59, %v523_v62 }
 0x52f   :  { %v537_v0 = vsel %vm216_vm1, %v533_v63, -inf }
 0x530   :  { %538 = vmax.xlane.f32.xlu0 %v537_v0 }
 0x595   :  { %v536_v5 = vpop.xlane.xlu2 %535 }
 0x596   :  { %v540_v6 = vsub.f32 %v532_v57, %v536_v5 }
 0x598   :  { %v542_v7 = vmul.f32 1.442695, %v540_v6 }
 0x59a   :  { %972 = vpow2.f32 %v542_v7 }
 0x5a0   :  { %v973_v8 = vpop.eup %972 }
 0x5a1   :  { %v546_v9 = vsel %vm216_vm1, %v973_v8, 0.0 }
 0x5a2   :  { %547 = vadd.xlane.f32.xlu1 %v546_v9  ;;  %v755_v9 = vld [vmem:[%s1424_s13 + $0x30] sm:$0xff] }
 0x5a3   :  { %v539_v10 = vpop.xlane.xlu0 %538 }
 0x5a4   :  { %v541_v11 = vsub.f32 %v533_v63, %v539_v10  ;;  %v754_v10 = vld [vmem:[%s1424_s13 + $0x28] sm:$0xff] }
 0x5a6   :  { %v544_v12 = vmul.f32 1.442695, %v541_v11 }
 0x5a8   :  { %974 = vpow2.f32 %v544_v12 }
 0x5ae   :  { %v975_v13 = vpop.eup %974 }
 0x5af   :  { %v549_v14 = vsel %vm216_vm1, %v975_v13, 0.0 }
 0x5b0   :  { %550 = vadd.xlane.f32.xlu2 %v549_v14 }
 0x615   :  { %v548_v18 = vpop.xlane.xlu1 %547 }
 0x616   :  { %976 = vrcp.f32 %v548_v18  ;;  %v563_v25 = vand.u32 2147483648, %v548_v18  ;;  %v561_v27 = vand.u32 2147483647, %v548_v18  ;;  %vm557_vm10 = vweird.f32 %v548_v18 }
 0x618   :  { %v564_v30 = vor.u32 1.1754944e-38, %v563_v25  ;;  %vm562_vm12 = vcmp.eq.f32.partialorder %v561_v27, 8.507059e+37 }
 0x61c   :  { %v977_v22 = vpop.eup %976 }
 0x61d   :  { %v553_v23 = vmul.f32 %v977_v22, %v548_v18  ;;  %vm558_vm9 = vweird.f32 %v977_v22 }
 0x61e   :  { %vm559_vm11 = vmor %vm557_vm10, %vm558_vm9 }
 0x61f   :  { %v554_v24 = vsub.f32 1.0, %v553_v23 }
 0x621   :  { %v555_v26 = vmul.f32 %v977_v22, %v554_v24  ;;  %v951_v24 = vld [vmem:[%s1426_s15 + $0x2] ss:$0 sm:$0xff] }
 0x623   :  { %v556_v28 = vadd.f32 %v977_v22, %v555_v26  ;;  %v551_v29 = vpop.xlane.xlu2 %550 }
 0x624   :  { %978 = vrcp.f32 %v551_v29  ;;  %v578_v37 = vand.u32 2147483648, %v551_v29  ;;  %v576_v39 = vand.u32 2147483647, %v551_v29  ;;  %vm572_vm14 = vweird.f32 %v551_v29 }
 0x625   :  { %v560_v31 = vsel %vm559_vm11, %v977_v22, %v556_v28  ;;  %v952_v28 = vld [vmem:[%s1426_s15 + $0x3] ss:$0 sm:$0xff] }
 0x626   :  { %v565_v32 = vsel %vm562_vm12, %v564_v30, %v560_v31  ;;  %v579_v41 = vor.u32 1.1754944e-38, %v578_v37  ;;  %vm577_vm2 = vcmp.eq.f32.partialorder %v576_v39, 8.507059e+37  ;;  %v750_v39 = vld [vmem:[%s1424_s13 + $0x8] sm:$0xff] }
 0x627   :  { %v566_v33 = vmul.f32 %v973_v8, %v565_v32  ;;  %v756_v8 = vld [vmem:[%s1424_s13 + $0x38] sm:$0xff] }
 0x628   :  { %773 = vmatpush.msra.mxu3 %v756_v8 }
 0x629   :  { %930 = vmatmul.msk.f32.vlgmr.msrb.gmra.mxu3 %vm216_vm1, %v566_v33  ;;  %882 = vst.msk [vmem:[#allocation2] sm:$0xff] %vm216_vm1, %v566_v33 }
 0x62a   :  { %v979_v34 = vpop.eup %978  ;;  %774 = vmatpush.msra.mxu3 %v755_v9 }
 0x62b   :  { %v568_v35 = vmul.f32 %v979_v34, %v551_v29  ;;  %vm573_vm13 = vweird.f32 %v979_v34 }
 0x62c   :  { %vm574_vm15 = vmor %vm572_vm14, %vm573_vm13  ;;  %775 = vmatpush.msra.mxu3 %v754_v10 }
 0x62d   :  { %v569_v36 = vsub.f32 1.0, %v568_v35 }
 0x62f   :  { %v570_v38 = vmul.f32 %v979_v34, %v569_v36 }
 0x631   :  { %v571_v40 = vadd.f32 %v979_v34, %v570_v38  ;;  %v751_v38 = vld [vmem:[%s1424_s13 + $0x10] sm:$0xff] }
 0x633   :  { %v575_v42 = vsel %vm574_vm15, %v979_v34, %v571_v40  ;;  %v749_v40 = vld [vmem:[%s1424_s13] sm:$0xff] }
 0x634   :  { %v580_v43 = vsel %vm577_vm2, %v579_v41, %v575_v42  ;;  %v953_v41 = vld [vmem:[%s1426_s15 + $0x6] ss:$0 sm:$0xff] }
 0x635   :  { %v581_v45 = vmul.f32 %v975_v13, %v580_v43  ;;  %v753_v13 = vld [vmem:[%s1424_s13 + $0x20] sm:$0xff] }
 0x636   :  { %776 = vmatpush.msra.mxu3 %v753_v13 }
 0x637   :  { %931 = vmatmul.msk.f32.vlgmr.msrb.gmra.mxu0 %vm216_vm1, %v581_v45  ;;  %883 = vst.msk [vmem:[#allocation2 + $0x8] sm:$0xff] %vm216_vm1, %v581_v45 }
 0x638   :  { %777 = vmatpush.msra.mxu3 %v752_v16  ;;  %898 = dma.vmem_to_hbm [thread:$0]  %s891_s22, 256, %s893_s24, [#allocation3], %s1017_s25, %s1017_s25, %s1018_s7  }
 0x63a   :  { %778 = vmatpush.msra.mxu3 %v751_v38 }
 0x63c   :  { %779 = vmatpush.msra.mxu3 %v750_v39 }
 0x63e   :  { %780 = vmatpush.msra.mxu3 %v749_v40 }
 0x6ac   :  { %v602_v47 = vpop.f32.mrf.mxu3 }
 0x6ad   :  { %932 = vmatmul.msk.f32.vlgmr.msra.gmra.mxu1 %vm78_vm0, %v602_v47 }
 0x6b4   :  { %v625_v48 = vpop.f32.mrf.mxu0 }
 0x6b5   :  { %933 = vmatmul.msk.f32.gmra.mxu1 %vm78_vm0, %v625_v48 }
 0x72a   :  { %v655_v50 = vpop.f32.mrf.mxu1 }
 0x72b   :  { %v661_v51 = vadd.f32 %v655_v50, %v1254_v44  ;;  %v954_v50 = vld [vmem:[%s1426_s15 + $0x7] ss:$0 sm:$0xff] }
 0x72d   :  { %v663_v52 = vsel %vm78_vm0, %v661_v51, 0.0 }
 0x72e   :  { %664 = vadd.xlane.f32.xlu0 %v663_v52 }
 0x732   :  { %v658_v53 = vpop.f32.mrf.mxu1 }
 0x733   :  { %v662_v54 = vadd.f32 %v658_v53, %v1259_v49  ;;  %v716_v49 = vld [vmem:[%s1423_s12 + $0x18] sm:$0xff] }
 0x734   :  { %736 = vmatpush.msrb.mxu2 %v716_v49 }
 0x735   :  { %v666_v55 = vsel %vm78_vm0, %v662_v54, 0.0 }
 0x736   :  { %667 = vadd.xlane.f32.xlu1 %v666_v55  ;;  %737 = vmatpush.msrb.mxu2 %v715_v2 }
 0x738   :  { %738 = vmatpush.msrb.mxu2 %v714_v3 }
 0x73a   :  { %739 = vmatpush.msrb.mxu2 %v713_v4  ;;  %v843_v4 = vld [vmem:[%s1425_s14 + $0x18] sm:$0xff] }
 0x73b   :  { %863 = vmatpush.msra.mxu0 %v843_v4 }
 0x7a1   :  { %v665_v56 = vpop.xlane.xlu0 %664 }
 0x7a2   :  { %v669_v57 = vmul.f32 %v665_v56, %v1195_v60 }
 0x7a4   :  { %v671_v58 = vsub.f32 %v661_v51, %v669_v57 }
 0x7a6   :  { %v673_v59 = vmul.f32 %v671_v58, %v671_v58 }
 0x7a8   :  { %v675_v61 = vsel %vm78_vm0, %v673_v59, 0.0 }
 0x7a9   :  { %v668_v62 = vpop.xlane.xlu1 %667  ;;  %676 = vadd.xlane.f32.xlu2 %v675_v61 }
 0x7aa   :  { %v670_v44 = vmul.f32 %v668_v62, %v1195_v60 }
 0x7ac   :  { %v672_v63 = vsub.f32 %v662_v54, %v670_v44 }
 0x7ae   :  { %v674_v0 = vmul.f32 %v672_v63, %v672_v63 }
 0x7b0   :  { %v678_v1 = vsel %vm78_vm0, %v674_v0, 0.0 }
 0x7b1   :  { %679 = vadd.xlane.f32.xlu0 %v678_v1 }
 0x81c   :  { %v677_v5 = vpop.xlane.xlu2 %676 }
 0x81d   :  { %v681_v6 = vmul.f32 %v677_v5, %v1195_v60  ;;  %v842_v5 = vld [vmem:[%s1425_s14 + $0x10] sm:$0xff] }
 0x81e   :  { %864 = vmatpush.msra.mxu0 %v842_v5 }
 0x81f   :  { %v683_v7 = vadd.f32 1e-05, %v681_v6  ;;  %v841_v6 = vld [vmem:[%s1425_s14 + $0x8] sm:$0xff] }
 0x820   :  { %865 = vmatpush.msra.mxu0 %v841_v6 }
 0x821   :  { %980 = vrsqrt.f32 %v683_v7  ;;  %vm691_vm3 = vweird.f32 %v683_v7 }
 0x824   :  { %v680_v11 = vpop.xlane.xlu0 %679 }
 0x825   :  { %v682_v12 = vmul.f32 %v680_v11, %v1195_v60 }
 0x827   :  { %v981_v14 = vpop.eup %980  ;;  %v684_v15 = vadd.f32 1e-05, %v682_v12 }
 0x828   :  { %v686_v17 = vmul.f32 %v981_v14, %v683_v7  ;;  %vm692_vm1 = vweird.f32 %v981_v14  ;;  %v840_v7 = vld [vmem:[%s1425_s14] sm:$0xff] }
 0x829   :  { %982 = vrsqrt.f32 %v684_v15  ;;  %vm693_vm4 = vmor %vm691_vm3, %vm692_vm1  ;;  %vm701_vm6 = vweird.f32 %v684_v15  ;;  %866 = vmatpush.msra.mxu0 %v840_v7 }
 0x82a   :  { %v687_v18 = vmul.f32 %v981_v14, %v686_v17 }
 0x82c   :  { %v688_v19 = vmul.f32 0.5, %v687_v18 }
 0x82e   :  { %v689_v20 = vsub.f32 1.5, %v688_v19 }
 0x82f   :  { %v983_v21 = vpop.eup %982 }
 0x830   :  { %v690_v22 = vmul.f32 %v981_v14, %v689_v20  ;;  %v696_v23 = vmul.f32 %v983_v21, %v684_v15  ;;  %vm702_vm5 = vweird.f32 %v983_v21 }
 0x831   :  { %vm703_vm7 = vmor %vm701_vm6, %vm702_vm5 }
 0x832   :  { %v694_v25 = vsel %vm693_vm4, %v981_v14, %v690_v22  ;;  %v697_v26 = vmul.f32 %v983_v21, %v696_v23  ;;  %v955_v22 = vld [vmem:[%s1426_s15 + $0x4] ss:$0 sm:$0xff] }
 0x833   :  { %v705_v27 = vmul.f32 %v694_v25, %v671_v58  ;;  %v956_v25 = vld [vmem:[%s1426_s15 + $0x5] ss:$0 sm:$0xff] }
 0x834   :  { %v698_v29 = vmul.f32 0.5, %v697_v26 }
 0x835   :  { %v708_v30 = vmul.f32 %v951_v24, %v705_v27 }
 0x836   :  { %v699_v31 = vsub.f32 1.5, %v698_v29 }
 0x837   :  { %v711_v32 = vadd.f32 %v952_v28, %v708_v30 }
 0x838   :  { %v700_v33 = vmul.f32 %v983_v21, %v699_v31 }
 0x839   :  { %934 = vmatmul.msk.f32.vlgmr.msrb.gmra.mxu2 %vm78_vm0, %v711_v32 }
 0x83a   :  { %v704_v34 = vsel %vm703_vm7, %v983_v21, %v700_v33 }
 0x83b   :  { %v706_v35 = vmul.f32 %v704_v34, %v672_v63 }
 0x83d   :  { %v709_v36 = vmul.f32 %v951_v24, %v706_v35  ;;  %v957_v35 = vld [vmem:[%s1426_s15 + $0x8] ss:$0 sm:$0xff] }
 0x83f   :  { %v712_v37 = vadd.f32 %v952_v28, %v709_v36 }
 0x841   :  { %935 = vmatmul.msk.f32.gmra.mxu2 %vm78_vm0, %v712_v37 }
 0x8bc   :  { %v741_v42 = vpop.f32.mrf.mxu2 }
 0x8bd   :  { %v742_v43 = vadd.f32 %v953_v41, %v741_v42 }
 0x8bf   :  { %v747_v45 = vmax.f32 %v742_v43, 0.0 }
 0x8c1   :  { %936 = vmatmul.msk.f32.vlgmr.msra.gmra.mxu3 %vm758_vm8, %v747_v45 }
 0x8c4   :  { %v744_v46 = vpop.f32.mrf.mxu2 }
 0x8c5   :  { %v745_v47 = vadd.f32 %v953_v41, %v744_v46 }
 0x8c7   :  { %v748_v48 = vmax.f32 %v745_v47, 0.0 }
 0x8c9   :  { %937 = vmatmul.msk.f32.gmra.mxu3 %vm758_vm8, %v748_v48 }
 0x944   :  { %v782_v51 = vpop.f32.mrf.mxu3 }
 0x945   :  { %v783_v52 = vadd.f32 %v954_v50, %v782_v51 }
 0x947   :  { %v788_v53 = vadd.f32 %v783_v52, %v711_v32 }
 0x949   :  { %v790_v54 = vsel %vm78_vm0, %v788_v53, 0.0 }
 0x94a   :  { %791 = vadd.xlane.f32.xlu1 %v790_v54 }
 0x94c   :  { %v785_v55 = vpop.f32.mrf.mxu3 }
 0x94d   :  { %v786_v56 = vadd.f32 %v954_v50, %v785_v55 }
 0x94f   :  { %v789_v57 = vadd.f32 %v786_v56, %v712_v37 }
 0x951   :  { %v793_v58 = vsel %vm78_vm0, %v789_v57, 0.0 }
 0x952   :  { %794 = vadd.xlane.f32.xlu2 %v793_v58 }
 0x9bd   :  { %v792_v59 = vpop.xlane.xlu1 %791 }
 0x9be   :  { %v796_v61 = vmul.f32 %v792_v59, %v1195_v60 }
 0x9c0   :  { %v798_v62 = vsub.f32 %v788_v53, %v796_v61 }
 0x9c2   :  { %v800_v44 = vmul.f32 %v798_v62, %v798_v62 }
 0x9c4   :  { %v802_v63 = vsel %vm78_vm0, %v800_v44, 0.0 }
 0x9c5   :  { %803 = vadd.xlane.f32.xlu0 %v802_v63  ;;  %v795_v0 = vpop.xlane.xlu2 %794 }
 0x9c6   :  { %v797_v1 = vmul.f32 %v795_v0, %v1195_v60 }
 0x9c8   :  { %v799_v49 = vsub.f32 %v789_v57, %v797_v1 }
 0x9ca   :  { %v801_v2 = vmul.f32 %v799_v49, %v799_v49 }
 0x9cc   :  { %v805_v3 = vsel %vm78_vm0, %v801_v2, 0.0 }
 0x9cd   :  { %806 = vadd.xlane.f32.xlu1 %v805_v3 }
 0xa38   :  { %v804_v8 = vpop.xlane.xlu0 %803 }
 0xa39   :  { %v808_v9 = vmul.f32 %v804_v8, %v1195_v60 }
 0xa3b   :  { %v810_v10 = vadd.f32 1e-05, %v808_v9 }
 0xa3d   :  { %984 = vrsqrt.f32 %v810_v10  ;;  %vm818_vm10 = vweird.f32 %v810_v10 }
 0xa40   :  { %v807_v11 = vpop.xlane.xlu1 %806 }
 0xa41   :  { %v809_v12 = vmul.f32 %v807_v11, %v1195_v60 }
 0xa43   :  { %v985_v13 = vpop.eup %984  ;;  %v811_v14 = vadd.f32 1e-05, %v809_v12 }
 0xa44   :  { %v813_v15 = vmul.f32 %v985_v13, %v810_v10  ;;  %vm819_vm9 = vweird.f32 %v985_v13 }
 0xa45   :  { %986 = vrsqrt.f32 %v811_v14  ;;  %vm820_vm11 = vmor %vm818_vm10, %vm819_vm9  ;;  %vm828_vm13 = vweird.f32 %v811_v14 }
 0xa46   :  { %v814_v16 = vmul.f32 %v985_v13, %v813_v15 }
 0xa48   :  { %v815_v17 = vmul.f32 0.5, %v814_v16 }
 0xa4a   :  { %v816_v18 = vsub.f32 1.5, %v815_v17 }
 0xa4b   :  { %v987_v19 = vpop.eup %986 }
 0xa4c   :  { %v817_v20 = vmul.f32 %v985_v13, %v816_v18  ;;  %v823_v21 = vmul.f32 %v987_v19, %v811_v14  ;;  %vm829_vm12 = vweird.f32 %v987_v19 }
 0xa4d   :  { %vm830_vm14 = vmor %vm828_vm13, %vm829_vm12 }
 0xa4e   :  { %v821_v23 = vsel %vm820_vm11, %v985_v13, %v817_v20  ;;  %v824_v24 = vmul.f32 %v987_v19, %v823_v21 }
 0xa4f   :  { %v832_v60 = vmul.f32 %v821_v23, %v798_v62 }
 0xa50   :  { %v825_v26 = vmul.f32 0.5, %v824_v24 }
 0xa51   :  { %v835_v27 = vmul.f32 %v955_v22, %v832_v60 }
 0xa52   :  { %v826_v28 = vsub.f32 1.5, %v825_v26 }
 0xa53   :  { %v838_v29 = vadd.f32 %v956_v25, %v835_v27 }
 0xa54   :  { %v827_v30 = vmul.f32 %v987_v19, %v826_v28 }
 0xa55   :  { %938 = vmatmul.msk.f32.vlgmr.msra.gmra.mxu0 %vm78_vm0, %v838_v29 }
 0xa56   :  { %v831_v31 = vsel %vm830_vm14, %v987_v19, %v827_v30 }
 0xa57   :  { %v833_v32 = vmul.f32 %v831_v31, %v799_v49 }
 0xa59   :  { %v836_v33 = vmul.f32 %v955_v22, %v833_v32 }
 0xa5b   :  { %v839_v34 = vadd.f32 %v956_v25, %v836_v33 }
 0xa5d   :  { %939 = vmatmul.msk.f32.gmra.mxu0 %vm78_vm0, %v839_v34 }
 0xad2   :  { %v868_v36 = vpop.f32.mrf.mxu0 }
 0xad3   :  { %v869_v37 = vadd.f32 %v957_v35, %v868_v36 }
 0xad5   :  { %v940_v38 = vclamps-f32 %v869_v37, 3.1415927 }
 0xad7   :  { %878 = vst [vmem:[%s1427_s16] sm:$0xff] %v940_v38 }
 0xada   :  { %v871_v39 = vpop.f32.mrf.mxu0 }
 0xadb   :  { %v872_v40 = vadd.f32 %v957_v35, %v871_v39 }
 0xadd   :  { %v941_v41 = vclamps-f32 %v872_v40, 3.1415927 }
 0xadf   :  { %879 = vst [vmem:[%s1427_s16 + $0x8] sm:$0xff] %v941_v41 }
 0xae0   :  { %1012 = dma.done.wait [#allocation3], 256  }
 0xae1   :  { %1013 = vsyncadd [#allocation3], 4294967040 }
 0xae2   :  { %905 = vsyncpa [#allocation3], 1 }

</bundles_post_ra>
